<compile_context>
chip_gen: v7x
topology: tpu7x:2x2x1
jax: 0.10.0
libtpu: 0.0.40
codegen_flags: <defaults>
</compile_context>

<pallas_src>
import functools

import jax
import jax.numpy as jnp
from jax.experimental import pallas as pl
from jax.experimental.pallas import tpu as pltpu

_LANES = 128
_SUBLANES = 8
_CHUNK_ROWS = 256     # rows folded per inner-loop step (modest vreg working set)
_FOLD_ROWS = 64       # register-carry accumulator height (ILP for the VPU adds)


def _chip_defaults():
    """(num_shards, target_block_bytes) per TPU generation."""
    kind = ""
    try:
        kind = jax.devices()[0].device_kind.lower()
    except Exception:
        pass
    if "v5 lite" in kind or "v5e" in kind or "v5lite" in kind:
        return 1, 4 << 20       # 4 MiB blocks: 8 MiB double-buffered < 16 MiB scoped default
    if "v6" in kind:
        return 1, 8 << 20       # 8 MiB blocks: 16 MiB double-buffered < 32 MiB scoped default
    if "7" in kind:
        return 2, 8 << 20       # v7x: 2 TensorCores/chip, 64 MiB VMEM per TC
    return 1, 4 << 20           # conservative default for unknown chips


def _block_partial_sum(x_ref, base_row, *, chunk, fold, ncols, n_chunks,
                       rows_valid, mask):
    """Sum the (optionally row-masked) current (br, ncols) tile into a (fold, ncols) f32 carry."""

    def body(r, acc):
        row0 = pl.multiple_of(r * chunk, _SUBLANES)
        # transform / norm_foo are identity in the base class (lambda x: x).
        # TODO(synk): concrete subclasses override `compute`; plug their
        # componentwise loss here (still an elementwise map before the reduce).
        x = x_ref[pl.ds(row0, chunk), :].astype(jnp.float32)
        if mask:
            row_id = (base_row + row0 +
                      jax.lax.broadcasted_iota(jnp.int32, (chunk, ncols), 0))
            x = jnp.where(row_id < rows_valid, x, 0.0)
        return acc + x.reshape(chunk // fold, fold, ncols).sum(axis=0)

    init = jnp.zeros((fold, ncols), jnp.float32)
    return jax.lax.fori_loop(0, n_chunks, body, init, unroll=n_chunks <= 8)


def _make_loss_sum_kernel(*, br, chunk, fold, ncols, rows_valid, needs_mask):
    n_chunks = br // chunk
    partial = functools.partial(_block_partial_sum, chunk=chunk, fold=fold,
                                ncols=ncols, n_chunks=n_chunks,
                                rows_valid=rows_valid)

    def kernel(x_ref, o_ref, acc_ref):
        k = pl.program_id(1)
        k_last = pl.num_programs(1) - 1

        @pl.when(k == 0)
        def _():
            acc_ref[...] = jnp.zeros_like(acc_ref)

        base_row = k * br

        if needs_mask:
            # Only the last row-block of each shard is ragged; keep the
            # steady-state (full) blocks free of masking VPU work.
            @pl.when(k != k_last)
            def _():
                acc_ref[...] += partial(x_ref, base_row, mask=False)

            @pl.when(k == k_last)
            def _():
                acc_ref[...] += partial(x_ref, base_row, mask=True)
        else:
            acc_ref[...] += partial(x_ref, base_row, mask=False)

        @pl.when(k == k_last)
        def _():
            # Single expensive cross-lane/cross-sublane reduce per shard.
            o_ref[0, 0] = jnp.sum(acc_ref[...])

    return kernel


def loss_forward(x_fake, reg=1.0, *, min_kernel_bytes=1 << 20,
                 block_bytes=None, num_shards=None):
    """reg * mean(identity(x_fake)) computed with a Pallas TPU streaming-sum kernel."""
    total = int(x_fake.size)
    itemsize = jnp.dtype(x_fake.dtype).itemsize

    def _xla_fallback():
        # Plain XLA reduce: one HBM pass, no pallas_call fixed overhead.
        return jnp.float32(reg) * jnp.mean(x_fake.astype(jnp.float32))

    if x_fake.ndim == 0 or total == 0 or total * itemsize < min_kernel_bytes:
        return _xla_fallback()

    auto_shards, auto_bytes = _chip_defaults()
    num_shards = auto_shards if num_shards is None else int(num_shards)
    block_bytes = min(auto_bytes if block_bytes is None else int(block_bytes), 16 << 20)

    # Zero-copy 2-D lane view of the flattened input: lane-dense (rows, 128)
    # when the element count allows it, otherwise keep the natural trailing
    # dim as the lane dim (still a pure row-major bitcast reshape, no HBM copy).
    if total % _LANES == 0:
        ncols = _LANES
    else:
        ncols = int(x_fake.shape[-1])
    rows = total // ncols
    lanes_padded = -(-ncols // _LANES) * _LANES        # VMEM lane padding of a tile

    # Pathological trailing dim: even an 8-row double-buffered block would blow VMEM.
    if 2 * _SUBLANES * lanes_padded * itemsize > (32 << 20):
        return _xla_fallback()

    if rows % num_shards != 0 or rows < num_shards * _SUBLANES:
        num_shards = 1
    rows_per_shard = rows // num_shards

    # Block sizing by VMEM bytes (dtype + lane-padding aware), clamped to the shard.
    br = max(_SUBLANES, block_bytes // (lanes_padded * itemsize))
    br = (br // _SUBLANES) * _SUBLANES
    br = min(br, -(-rows_per_shard // _SUBLANES) * _SUBLANES)
    br = max(br, _SUBLANES)
    chunk = min(_CHUNK_ROWS, br)
    br = (br // chunk) * chunk
    fold = min(_FOLD_ROWS, chunk)
    while chunk % fold:
        fold -= _SUBLANES
    fold = max(fold, _SUBLANES)

    kblocks = -(-rows_per_shard // br)
    needs_mask = (rows_per_shard % br) != 0

    x3d = x_fake.reshape(num_shards, rows_per_shard, ncols)   # free view, no copy

    kernel = _make_loss_sum_kernel(br=br, chunk=chunk, fold=fold, ncols=ncols,
                                   rows_valid=rows_per_shard, needs_mask=needs_mask)

    block_vmem_bytes = br * lanes_padded * itemsize
    vmem_limit = int(min(2 * block_vmem_bytes + (16 << 20), 48 << 20))

    partial_sums = pl.pallas_call(
        kernel,
        out_shape=jax.ShapeDtypeStruct((num_shards, 1), jnp.float32),
        grid_spec=pltpu.PrefetchScalarGridSpec(
            num_scalar_prefetch=0,
            grid=(num_shards, kblocks),
            in_specs=[
                # leading shard dim squeezed out; kernel sees (br, ncols)
                pl.BlockSpec((None, br, ncols), lambda i, k: (i, k, 0)),
            ],
            out_specs=pl.BlockSpec(
                (1, 1), lambda i, k: (i, 0), memory_space=pltpu.SMEM
            ),
            scratch_shapes=[pltpu.VMEM((fold, ncols), jnp.float32)],
        ),
        compiler_params=pltpu.CompilerParams(
            # Shard axis may run on both TensorCores (v7x); the inner axis
            # carries the running-sum accumulator so it must stay "arbitrary".
            # TODO(synk): on v7x, verify via xprof that "parallel" really splits
            # the shard axis across both TCs; if not, switch to pltpu.CORE_PARALLEL.
            dimension_semantics=("parallel", "arbitrary"),
            vmem_limit_bytes=vmem_limit,
        ),
        cost_estimate=pl.CostEstimate(
            flops=total, transcendentals=0,
            bytes_accessed=total * itemsize + num_shards * 4,
        ),
    )(x3d)

    # Divide by the ORIGINAL element count (masked tail rows contribute 0).
    return jnp.float32(reg) * (jnp.sum(partial_sums) / jnp.float32(total))


if __name__ == "__main__":
    key = jax.random.PRNGKey(0)
    k0, k1, k2 = jax.random.split(key, 3)

    reg = 1.0
    threshold = 10.0

    # Small shape consistent with a generated time-series batch [N, L, C].
    N, L, C = 2, 64, 32
    x_fake = jax.random.normal(k0, (N, L, C), dtype=jnp.float32)

    # Force the Pallas path (the default fast path would route tiny inputs to jnp.mean).
    loss = loss_forward(x_fake, reg=reg, min_kernel_bytes=0)
    jax.block_until_ready(loss)
    ref = reg * jnp.mean(x_fake)
    assert jnp.allclose(loss, ref, atol=1e-5, rtol=1e-5), (loss, ref)

    # Non-128-divisible element count -> natural-trailing-dim layout + in-kernel row mask.
    x_odd = jax.random.normal(k1, (3, 37, 5), dtype=jnp.float32)
    loss_odd = loss_forward(x_odd, reg=0.5, min_kernel_bytes=0)
    jax.block_until_ready(loss_odd)
    ref_odd = 0.5 * jnp.mean(x_odd)
    assert jnp.allclose(loss_odd, ref_odd, atol=1e-5, rtol=1e-5), (loss_odd, ref_odd)

    # bf16 input exercises dtype-aware block sizing + per-chunk in-kernel upcast.
    x_bf16 = jax.random.normal(k2, (4, 128, 64), dtype=jnp.bfloat16)
    loss_bf16 = loss_forward(x_bf16, reg=2.0, min_kernel_bytes=0)
    jax.block_until_ready(loss_bf16)
    ref_bf16 = 2.0 * jnp.mean(x_bf16.astype(jnp.float32))
    assert jnp.allclose(loss_bf16, ref_bf16, atol=1e-4, rtol=1e-4), (loss_bf16, ref_bf16)

    # Also works under jit.
    loss_jit = jax.jit(lambda x: loss_forward(x, reg=reg, min_kernel_bytes=0))(x_fake)
    jax.block_until_ready(loss_jit)
    assert jnp.allclose(loss_jit, ref, atol=1e-5, rtol=1e-5), (loss_jit, ref)

    # Default call: tiny input takes the documented plain-XLA fast path.
    loss_fast = loss_forward(x_fake, reg=reg)
    jax.block_until_ready(loss_fast)
    assert jnp.allclose(loss_fast, ref, atol=1e-5, rtol=1e-5), (loss_fast, ref)

    # `success` property analogue (loss_componentwise == identity(x_fake) here).
    _success = bool(jnp.all(x_fake <= threshold))

    print("KERNEL_OK")
</pallas_src>

<mosaic_0001>
module attributes {stable_mosaic.version = 11 : i64} {
  func.func @kernel(%arg0: i32, %arg1: i32, %arg2: memref<1x32x128xf32, #tpu.memory_space<vmem>>, %arg3: memref<1x1xf32, #tpu.memory_space<smem>>, %arg4: memref<32x128xf32, #tpu.memory_space<vmem>>) attributes {dimension_semantics = [#tpu.dimension_semantics<parallel>, #tpu.dimension_semantics<arbitrary>], iteration_bounds = array<i64: 1, 1>, scalar_prefetch = 0 : i64, scratch_operands = 1 : i64, tpu.core_type = #tpu.core_type<tc>, window_params = [{transform_indices = @transform_0, window_bounds = array<i64: 1, 32, 128>}, {transform_indices = @transform_1, window_bounds = array<i64: 1, 1>}]} {
    %c0_i32 = arith.constant 0 : i32
    %0 = arith.cmpi eq, %arg1, %c0_i32 : i32
    %1 = arith.extui %0 : i1 to i32
    %c0_i32_0 = arith.constant 0 : i32
    %2 = arith.cmpi ne, %1, %c0_i32_0 : i32
    scf.if %2 {
      %cst_10 = arith.constant 0.000000e+00 : f32
      %18 = vector.broadcast %cst_10 : f32 to vector<32x128xf32>
      %c0_11 = arith.constant 0 : index
      %c0_12 = arith.constant 0 : index
      %19 = vector.load %arg4[%c0_11, %c0_12] : memref<32x128xf32, #tpu.memory_space<vmem>>, vector<32x128xf32>
      tpu.vector_store %arg4[%c0_11, %c0_12], %18 {strides = array<i32>} : memref<32x128xf32, #tpu.memory_space<vmem>>, vector<32x128xf32>,
    } else {
    }
    %c0 = arith.constant 0 : index
    %c0_1 = arith.constant 0 : index
    %3 = vector.load %arg4[%c0, %c0_1] : memref<32x128xf32, #tpu.memory_space<vmem>>, vector<32x128xf32>
    %cst = arith.constant 0.000000e+00 : f32
    %4 = vector.broadcast %cst : f32 to vector<32x128xf32>
    %c0_i32_2 = arith.constant 0 : i32
    %c32_i32 = arith.constant 32 : i32
    %5 = arith.muli %c0_i32_2, %c32_i32 : i32
    %6 = tpu.assume_multiple %5, 8 : i32
    %c0_3 = arith.constant 0 : index
    %7 = arith.index_cast %6 : i32 to index
    %c0_4 = arith.constant 0 : index
    %8 = vector.load %arg2[%c0_3, %7, %c0_4] : memref<1x32x128xf32, #tpu.memory_space<vmem>>, vector<1x32x128xf32>
    %9 = vector.shape_cast %8 : vector<1x32x128xf32> to vector<32x128xf32>
    %10 = vector.shape_cast %9 : vector<32x128xf32> to vector<1x32x128xf32>
    %cst_5 = arith.constant dense<0.000000e+00> : vector<32x128xf32>
    %11 = vector.multi_reduction <add>, %10, %cst_5 [0] : vector<1x32x128xf32> to vector<32x128xf32>
    %12 = arith.addf %4, %11 : vector<32x128xf32>
    %c1_i32 = arith.constant 1 : i32
    %13 = arith.addf %3, %12 : vector<32x128xf32>
    %c0_6 = arith.constant 0 : index
    %c0_7 = arith.constant 0 : index
    %14 = vector.load %arg4[%c0_6, %c0_7] : memref<32x128xf32, #tpu.memory_space<vmem>>, vector<32x128xf32>
    tpu.vector_store %arg4[%c0_6, %c0_7], %13 {strides = array<i32>} : memref<32x128xf32, #tpu.memory_space<vmem>>, vector<32x128xf32>,
    %c0_i32_8 = arith.constant 0 : i32
    %15 = arith.cmpi eq, %arg1, %c0_i32_8 : i32
    %16 = arith.extui %15 : i1 to i32
    %c0_i32_9 = arith.constant 0 : i32
    %17 = arith.cmpi ne, %16, %c0_i32_9 : i32
    scf.if %17 {
      %c0_10 = arith.constant 0 : index
      %c0_11 = arith.constant 0 : index
      %18 = vector.load %arg4[%c0_10, %c0_11] : memref<32x128xf32, #tpu.memory_space<vmem>>, vector<32x128xf32>
      %19 = vector.shape_cast %18 : vector<32x128xf32> to vector<1x32x128xf32>
      %cst_12 = arith.constant dense<0.000000e+00> : vector<1xf32>
      %20 = vector.multi_reduction <add>, %19, %cst_12 [1, 2] : vector<1x32x128xf32> to vector<1xf32>
      %21 = vector.shape_cast %20 : vector<1xf32> to vector<1x1x1xf32>
      %22 = vector.extract %21[0, 0, 0] : f32 from vector<1x1x1xf32>
      %c0_13 = arith.constant 0 : index
      %c0_14 = arith.constant 0 : index
      %23 = memref.load %arg3[%c0_13, %c0_14] : memref<1x1xf32, #tpu.memory_space<smem>>
      memref.store %22, %arg3[%c0_13, %c0_14] : memref<1x1xf32, #tpu.memory_space<smem>>
    } else {
    }
    return
  }
  func.func @transform_0(%arg0: i32, %arg1: i32) -> (i32, i32, i32) {
    %c0_i32 = arith.constant 0 : i32
    %c0_i32_0 = arith.constant 0 : i32
    return %arg0, %arg1, %c0_i32 : i32, i32, i32
  }
  func.func @transform_1(%arg0: i32, %arg1: i32) -> (i32, i32) {
    %c0_i32 = arith.constant 0 : i32
    %c0_i32_0 = arith.constant 0 : i32
    return %arg0, %c0_i32 : i32, i32
  }
}

</mosaic_0001>

<bundles_post_ra>
// kernel: tpu_custom_call.1
= control target key start
LH: loop header
LB: loop body
LE: loop exit
PB: predicated region body
PF: predicated region fallthrough
CT: control target
= control target key end

     0   :  { %6 = vsyncpa [#allocation4], 0  ;;  %s170_s0 = inlined_call_operand.hbm [shape: f32[1,32,128], index: 0, kind: input, shape index: {}]   ;;  %s171_s1 = inlined_call_operand.hbm [shape: f32[1,1], index: 1, kind: output, shape index: {}]  }
   0x1   :  { %7 = vsyncpa [#allocation5], 0  ;;  %s132_s6 = smov [#allocation3]   ;;  %s96_s10 = scalar_lea.hbm %s170_s0, 512 }
   0x2   :  { %s13_s7 = sshll.u32 %s132_s6, 4  ;;  %p97_p0 = scmp.ne.s32.totalorder %s170_s0, %s96_s10  ;;  %s14_s7 = int_to_ptr.vmem [resolvable:$true] %s13_s7 }
   0x3   :  { %p100_p1 = scmp.lt.u32.totalorder %s96_s10, %s170_s0 }
   0x5   :  { %p102_p2 = pnand %p100_p1, %p97_p0 }
   0x7   :  { %105 = shalt.err (!%p102_p2)
}
   0x8   :  { %s106_s15 = scalar_lea.vmem %s14_s7, 512  ;;  %p111_p4 = scmp.lt.s32.totalorder %s14_s7, %s14_s7 }
   0x9   :  { %p107_p3 = scmp.ne.s32.totalorder %s14_s7, %s106_s15  ;;  %p112_p5 = scmp.lt.s32.totalorder %s106_s15, %s106_s15 }
   0xb   :  { %p113_p6 = por %p112_p5, %p111_p4 }
   0xd   :  { %p114_p7 = pnand %p113_p6, %p107_p3 }
   0xf   :  { %117 = shalt.err (!%p114_p7)
}
  0x10   :  { %s133_s16 = smov 128   ;;  %s134_s17 = smov 8  }
  0x11   :  { %19 = dma.hbm_to_vmem [thread:$0]  %s170_s0, 512, %s14_s7, [#allocation4], %s133_s16, %s133_s16, %s134_s17  }
  0x12   :  { %128 = dma.done.wait [#allocation4], 512  }
  0x13   :  { %129 = vsyncadd [#allocation4], 4294966784  ;;  %v35_v0 = vld [vmem:[#allocation3] sm:$0xff]  ;;  %v36_v1 = vld [vmem:[#allocation3 + $0x8] sm:$0xff]  ;;  %s118_s22 = scalar_lea.hbm %s171_s1, 16 }
  0x14   :  { %v37_v2 = vld [vmem:[#allocation3 + $0x10] sm:$0xff]  ;;  %v62_v3 = vadd.f32 %v36_v1, %v35_v0  ;;  %v38_v4 = vld [vmem:[#allocation3 + $0x18] sm:$0xff]  ;;  %p119_p8 = scmp.ne.s32.totalorder %s171_s1, %s118_s22  ;;  %p122_p9 = scmp.lt.u32.totalorder %s118_s22, %s171_s1 }
  0x16   :  { %v63_v5 = vadd.f32 %v62_v3, %v37_v2  ;;  %p124_p10 = pnand %p122_p9, %p119_p8 }
  0x18   :  { %v64_v6 = vadd.f32 %v63_v5, %v38_v4 }
  0x1a   :  { %65 = vadd.xlane.f32.xlu0 %v64_v6 }
  0xa7   :  { %v66_v7 = vpop.xlane.xlu0 %65 }
  0xa8   :  { %v67_v8 = vrot.slane %v66_v7, 4 }
  0xaa   :  { %v68_v9 = vadd.f32 %v67_v8, %v66_v7 }
  0xac   :  { %v69_v10 = vrot.slane %v68_v9, 2 }
  0xae   :  { %v70_v11 = vadd.f32 %v69_v10, %v68_v9 }
  0xb0   :  { %v71_v12 = vrot.slane %v70_v11, 1 }
  0xb2   :  { %v72_v13 = vadd.f32 %v71_v12, %v70_v11 }
  0xb4   :  { %90 = vpush %v72_v13 }
  0xe5   :  { %s91_s20 = spop %90 }
  0xe6   :  { %75 = sst [smem:[#allocation6]] %s91_s20 }
  0xe7   :  { %127 = shalt.err (!%p124_p10)
}
  0xe8   :  { %s135_s27 = smov [#allocation6]  }
  0xe9   :  { %83 = dma.smem_to_hbm %s135_s27, 16, %s171_s1, [#allocation5]  }
  0xea   :  { %130 = dma.done.wait [#allocation5], 16  }
  0xeb   :  { %131 = vsyncadd [#allocation5], 4294967280 }
  0xec   :  { %87 = sfence }
  0xed   :  { %88 = vsyncpa [#allocation4], 1 }
  0xee   :  { %89 = vsyncpa [#allocation5], 1 }

</bundles_post_ra>
